<compile_context>
chip_gen: v5e
topology: v5e:2x2
jax: 0.10.0
libtpu: 0.0.40
codegen_flags: <defaults>
</compile_context>

<pallas_src>
import jax
import jax.numpy as jnp
from jax.experimental import pallas as pl
from jax.experimental.pallas import tpu as pltpu

IN_FEATURES = 512
_LANE = 128
_SUBLANE = 8
# Conservative VMEM budget (bytes): leaves headroom under v7x's 64 MiB
# physical VMEM even if the weight ends up double-buffered.
_VMEM_BUDGET = 44 << 20


def _round_up(x, m):
    return ((x + m - 1) // m) * m


def _cdiv(a, b):
    return (a + b - 1) // b


def toytext_kernel(x_ref, w_ref, b_ref, o_ref):
    # ReLU (VPU) -> matmul (MXU, f32 accumulate) -> bias add (VPU).
    x = jnp.maximum(x_ref[...], 0.0)
    acc = jnp.dot(x, w_ref[...], preferred_element_type=jnp.float32)
    o_ref[...] = (acc + b_ref[...]).astype(o_ref.dtype)


def toytext_prepare_params(w_t, b):
    """Pad Linear params to a lane-dense (multiple-of-128) hidden dim ONCE.

    w_t: (512, H) pre-transposed PyTorch Linear weight, b: (1, H) bias.
    Returns (w_t_pad, b_pad, H).  No-op when H is already lane-aligned.
    """
    K, H = w_t.shape
    assert K == IN_FEATURES and b.shape == (1, H)
    H_pad = _round_up(H, _LANE)
    if H_pad != H:
        w_t = jnp.pad(w_t, ((0, 0), (0, H_pad - H)))
        b = jnp.pad(b, ((0, 0), (0, H_pad - H)))
    return w_t, b, H


def _vmem_bytes(tm, k, h_pad, itemsize=4):
    # Conservative accounting: text + output double-buffered, weight + bias
    # counted double-buffered too (in case single-buffering is unavailable).
    return (2 * tm * k + 2 * tm * h_pad + 2 * k * h_pad + 2 * h_pad) * itemsize


def _build_call(N, K, H_pad, TM, grid, vmem_limit, single_buffer_params):
    param_mode = (
        dict(pipeline_mode=pl.Buffered(1)) if single_buffer_params else {}
    )
    return pl.pallas_call(
        toytext_kernel,
        out_shape=jax.ShapeDtypeStruct((N, H_pad), jnp.float32),
        grid_spec=pl.GridSpec(
            grid=grid,
            in_specs=[
                # text tile (double-buffered by the pipeline).
                pl.BlockSpec((TM, K), lambda i: (i, 0)),
                # weight / bias: constant block index -> resident in VMEM.
                pl.BlockSpec((K, H_pad), lambda i: (0, 0), **param_mode),
                pl.BlockSpec((1, H_pad), lambda i: (0, 0), **param_mode),
            ],
            out_specs=pl.BlockSpec((TM, H_pad), lambda i: (i, 0)),
        ),
        compiler_params=pltpu.CompilerParams(
            # Batch tiles are independent -> shard across TCs (v7x megacore).
            dimension_semantics=("parallel",),
            vmem_limit_bytes=vmem_limit,
        ),
        cost_estimate=pl.CostEstimate(
            flops=2 * N * K * H_pad,
            bytes_accessed=4 * (N * K + K * H_pad + N * H_pad),
            transcendentals=0,
        ),
    )


def toytext_forward(text, w_t_pad, b_pad, hidden_size, *, tm=1024):
    """text: (N, 512) f32, w_t_pad: (512, H_pad) f32, b_pad: (1, H_pad) f32.

    Returns (N, hidden_size) f32.  Params must come from toytext_prepare_params.
    """
    N, K = text.shape
    H_pad = w_t_pad.shape[1]
    assert K == IN_FEATURES and w_t_pad.shape[0] == IN_FEATURES
    assert b_pad.shape == (1, H_pad) and H_pad % _LANE == 0

    # Batch tile: large enough to amortize per-step overhead, but
    #   (a) capped so there are >= 2 grid steps when N allows (v7x: 2 TCs),
    #   (b) capped so the pipelined tiles fit the VMEM budget.
    TM = min(tm, _round_up(max(_cdiv(N, 2), 1), _SUBLANE))
    TM = max(TM, _SUBLANE)
    while TM > _SUBLANE and _vmem_bytes(TM, K, H_pad) > _VMEM_BUDGET:
        TM = _round_up(max(TM // 2, _SUBLANE), _SUBLANE)

    grid = (_cdiv(N, TM),)
    vmem_limit = int(min(max(_vmem_bytes(TM, K, H_pad) + (4 << 20), 32 << 20),
                         56 << 20))

    try:
        out = _build_call(N, K, H_pad, TM, grid, vmem_limit, True)(
            text, w_t_pad, b_pad)
    except Exception:
        # pipeline_mode=pl.Buffered(1) not supported by this jax version's
        # TPU pallas_call pipeline -> fall back to default double buffering
        # (budget above already accounts for it).
        out = _build_call(N, K, H_pad, TM, grid, vmem_limit, False)(
            text, w_t_pad, b_pad)

    if H_pad != hidden_size:
        out = out[:, :hidden_size]
    return out


if __name__ == "__main__":
    key = jax.random.PRNGKey(0)
    k_x, k_w, k_b = jax.random.split(key, 3)

    N = 2            # batch
    HIDDEN = 32      # hidden_size (output dim of the text embedding)

    # Deterministic synthetic inputs / parameters (PyTorch Linear stores
    # weight (H, 512) and bias (H,); we keep the transposed weight (512, H)).
    text = jax.random.normal(k_x, (N, IN_FEATURES), dtype=jnp.float32)
    bound = 1.0 / (IN_FEATURES ** 0.5)
    w_t = jax.random.uniform(
        k_w, (IN_FEATURES, HIDDEN), dtype=jnp.float32, minval=-bound, maxval=bound
    )
    b = jax.random.uniform(
        k_b, (1, HIDDEN), dtype=jnp.float32, minval=-bound, maxval=bound
    )

    # Pad params once at init; per-call path has no pad pass over the input.
    w_t_pad, b_pad, H = toytext_prepare_params(w_t, b)

    out = toytext_forward(text, w_t_pad, b_pad, H)
    out = jax.block_until_ready(out)

    # Pure-JAX reference check.
    ref = jnp.maximum(text, 0.0) @ w_t + b
    assert out.shape == (N, HIDDEN)
    assert jnp.allclose(out, ref, atol=1e-5, rtol=1e-5)

    print("KERNEL_OK")
</pallas_src>

<mosaic_0001>
module attributes {stable_mosaic.version = 11 : i64} {
  func.func @toytext_kernel(%arg0: i32, %arg1: memref<8x512xf32, #tpu.memory_space<vmem>>, %arg2: memref<512x128xf32, #tpu.memory_space<vmem>>, %arg3: memref<1x128xf32, #tpu.memory_space<vmem>>, %arg4: memref<8x128xf32, #tpu.memory_space<vmem>>) attributes {dimension_semantics = [#tpu.dimension_semantics<parallel>], iteration_bounds = array<i64: 1>, scalar_prefetch = 0 : i64, scratch_operands = 0 : i64, tpu.core_type = #tpu.core_type<tc>, window_params = [{transform_indices = @transform_0, window_bounds = array<i64: 8, 512>}, {pipeline_mode = #tpu.pipeline_mode<synchronous>, transform_indices = @transform_1, window_bounds = array<i64: 512, 128>}, {pipeline_mode = #tpu.pipeline_mode<synchronous>, transform_indices = @transform_2, window_bounds = array<i64: 1, 128>}, {transform_indices = @transform_3, window_bounds = array<i64: 8, 128>}]} {
    %c0 = arith.constant 0 : index
    %c0_0 = arith.constant 0 : index
    %0 = vector.load %arg1[%c0, %c0_0] : memref<8x512xf32, #tpu.memory_space<vmem>>, vector<8x512xf32>
    %cst = arith.constant 0.000000e+00 : f32
    %1 = vector.broadcast %cst : f32 to vector<8x512xf32>
    %2 = arith.maximumf %0, %1 : vector<8x512xf32>
    %c0_1 = arith.constant 0 : index
    %c0_2 = arith.constant 0 : index
    %3 = vector.load %arg2[%c0_1, %c0_2] : memref<512x128xf32, #tpu.memory_space<vmem>>, vector<512x128xf32>
    %cst_3 = arith.constant dense<0.000000e+00> : vector<8x128xf32>
    %4 = tpu.matmul %2, %3, %cst_3 {dimension_numbers = #tpu.dot_dimension_numbers<[1], [0], [0], [1], [0, 0, 1, 1], [], []>} : vector<8x512xf32>, vector<512x128xf32>, vector<8x128xf32> -> vector<8x128xf32>
    %c0_4 = arith.constant 0 : index
    %c0_5 = arith.constant 0 : index
    %5 = vector.load %arg3[%c0_4, %c0_5] : memref<1x128xf32, #tpu.memory_space<vmem>>, vector<1x128xf32>
    %6 = vector.broadcast %5 : vector<1x128xf32> to vector<8x128xf32>
    %7 = arith.addf %4, %6 : vector<8x128xf32>
    %c0_6 = arith.constant 0 : index
    %c0_7 = arith.constant 0 : index
    %8 = vector.load %arg4[%c0_6, %c0_7] : memref<8x128xf32, #tpu.memory_space<vmem>>, vector<8x128xf32>
    tpu.vector_store %arg4[%c0_6, %c0_7], %7 {strides = array<i32>} : memref<8x128xf32, #tpu.memory_space<vmem>>, vector<8x128xf32>,
    return
  }
  func.func @transform_0(%arg0: i32) -> (i32, i32) {
    %c0_i32 = arith.constant 0 : i32
    %c0_i32_0 = arith.constant 0 : i32
    return %arg0, %c0_i32 : i32, i32
  }
  func.func @transform_1(%arg0: i32) -> (i32, i32) {
    %c0_i32 = arith.constant 0 : i32
    %c0_i32_0 = arith.constant 0 : i32
    %c0_i32_1 = arith.constant 0 : i32
    return %c0_i32, %c0_i32_0 : i32, i32
  }
  func.func @transform_2(%arg0: i32) -> (i32, i32) {
    %c0_i32 = arith.constant 0 : i32
    %c0_i32_0 = arith.constant 0 : i32
    %c0_i32_1 = arith.constant 0 : i32
    return %c0_i32, %c0_i32_0 : i32, i32
  }
  func.func @transform_3(%arg0: i32) -> (i32, i32) {
    %c0_i32 = arith.constant 0 : i32
    %c0_i32_0 = arith.constant 0 : i32
    return %arg0, %c0_i32 : i32, i32
  }
}

module attributes {stable_mosaic.version = 11 : i64} {
  func.func @toytext_kernel(%arg0: i32, %arg1: memref<8x512xf32, #tpu.memory_space<vmem>>, %arg2: memref<512x128xf32, #tpu.memory_space<vmem>>, %arg3: memref<1x128xf32, #tpu.memory_space<vmem>>, %arg4: memref<8x128xf32, #tpu.memory_space<vmem>>) attributes {dimension_semantics = [#tpu.dimension_semantics<parallel>], iteration_bounds = array<i64: 1>, scalar_prefetch = 0 : i64, scratch_operands = 0 : i64, tpu.core_type = #tpu.core_type<tc>, window_params = [{transform_indices = @transform_0, window_bounds = array<i64: 8, 512>}, {pipeline_mode = #tpu.pipeline_mode<synchronous>, transform_indices = @transform_1, window_bounds = array<i64: 512, 128>}, {pipeline_mode = #tpu.pipeline_mode<synchronous>, transform_indices = @transform_2, window_bounds = array<i64: 1, 128>}, {transform_indices = @transform_3, window_bounds = array<i64: 8, 128>}]} {
    %c0 = arith.constant 0 : index
    %c0_0 = arith.constant 0 : index
    %0 = vector.load %arg1[%c0, %c0_0] : memref<8x512xf32, #tpu.memory_space<vmem>>, vector<8x512xf32>
    %cst = arith.constant 0.000000e+00 : f32
    %1 = vector.broadcast %cst : f32 to vector<8x512xf32>
    %2 = arith.maximumf %0, %1 : vector<8x512xf32>
    %c0_1 = arith.constant 0 : index
    %c0_2 = arith.constant 0 : index
    %3 = vector.load %arg2[%c0_1, %c0_2] : memref<512x128xf32, #tpu.memory_space<vmem>>, vector<512x128xf32>
    %cst_3 = arith.constant dense<0.000000e+00> : vector<8x128xf32>
    %4 = tpu.matmul %2, %3, %cst_3 {dimension_numbers = #tpu.dot_dimension_numbers<[1], [0], [0], [1], [0, 0, 1, 1], [], []>} : vector<8x512xf32>, vector<512x128xf32>, vector<8x128xf32> -> vector<8x128xf32>
    %c0_4 = arith.constant 0 : index
    %c0_5 = arith.constant 0 : index
    %5 = vector.load %arg3[%c0_4, %c0_5] : memref<1x128xf32, #tpu.memory_space<vmem>>, vector<1x128xf32>
    %6 = vector.broadcast %5 : vector<1x128xf32> to vector<8x128xf32>
    %7 = arith.addf %4, %6 : vector<8x128xf32>
    %c0_6 = arith.constant 0 : index
    %c0_7 = arith.constant 0 : index
    %8 = vector.load %arg4[%c0_6, %c0_7] : memref<8x128xf32, #tpu.memory_space<vmem>>, vector<8x128xf32>
    tpu.vector_store %arg4[%c0_6, %c0_7], %7 {strides = array<i32>} : memref<8x128xf32, #tpu.memory_space<vmem>>, vector<8x128xf32>,
    return
  }
  func.func @transform_0(%arg0: i32) -> (i32, i32) {
    %c0_i32 = arith.constant 0 : i32
    %c0_i32_0 = arith.constant 0 : i32
    return %arg0, %c0_i32 : i32, i32
  }
  func.func @transform_1(%arg0: i32) -> (i32, i32) {
    %c0_i32 = arith.constant 0 : i32
    %c0_i32_0 = arith.constant 0 : i32
    %c0_i32_1 = arith.constant 0 : i32
    return %c0_i32, %c0_i32_0 : i32, i32
  }
  func.func @transform_2(%arg0: i32) -> (i32, i32) {
    %c0_i32 = arith.constant 0 : i32
    %c0_i32_0 = arith.constant 0 : i32
    %c0_i32_1 = arith.constant 0 : i32
    return %c0_i32, %c0_i32_0 : i32, i32
  }
  func.func @transform_3(%arg0: i32) -> (i32, i32) {
    %c0_i32 = arith.constant 0 : i32
    %c0_i32_0 = arith.constant 0 : i32
    return %arg0, %c0_i32 : i32, i32
  }
}

</mosaic_0001>

<bundles_post_ra>
// kernel: tpu_custom_call.1
= control target key start
LH: loop header
LB: loop body
LE: loop exit
PB: predicated region body
PF: predicated region fallthrough
CT: control target
= control target key end

     0   :  { %8 = vsyncpa [#allocation3], 0  ;;  %s368_s0 = inlined_call_operand.hbm [shape: f32[2,512], index: 0, kind: input, shape index: {}]   ;;  %s369_s1 = inlined_call_operand.hbm [shape: f32[512,128], index: 1, kind: input, shape index: {}]   ;;  %s370_s2 = inlined_call_operand.vmem [shape: f32[1,128], index: 2, kind: input, shape index: {}]   ;;  %s371_s3 = inlined_call_operand.hbm [shape: f32[2,128], index: 3, kind: output, shape index: {}]  }
   0x1   :  { %9 = vsyncpa [#allocation6], 0 }
   0x2   :  { %10 = vsyncpa [#allocation4], 0 }
   0x3   :  { %14 = vsyncadd [#allocation3], 384  ;;  %s15_s14 = sshll.u32 %s368_s0, 4  ;;  %s329_s15 = smov [#allocation2]   ;;  %s16_s14 = int_to_ptr.hbm [resolvable:$true] %s15_s14 }
   0x4   :  { %s17_s16 = sshll.u32 %s329_s15, 4  ;;  %s28_s19 = sshll.u32 %s369_s1, 4  ;;  %s18_s16 = int_to_ptr.vmem [resolvable:$true] %s17_s16  ;;  %s29_s19 = int_to_ptr.hbm [resolvable:$true] %s28_s19 }
   0x5   :  { %s330_s20 = smov 128   ;;  %s331_s21 = smov 8  }
   0x6   :  { %23 = dma.hbm_to_vmem [thread:$0]  %s16_s14, 128, %s18_s16, [#allocation3], %s330_s20, %s330_s20, %s331_s21  }
   0x7   :  { %s332_s22 = smov [#allocation5]  }
   0x8   :  { %s30_s23 = sshll.u32 %s332_s22, 4  ;;  %s31_s23 = int_to_ptr.vmem [resolvable:$true] %s30_s23 }
   0x9   :  { %36 = dma.hbm_to_vmem [thread:$0]  %s29_s19, 8192, %s31_s23, [#allocation6], %s330_s20, %s330_s20, %s331_s21  }
   0xa   :  { %323 = dma.done.wait [#allocation3], 512  }
   0xb   :  { %324 = vsyncadd [#allocation3], 4294966784 }
   0xc   :  { %325 = dma.done.wait [#allocation6], 8192  }
   0xd   :  { %326 = vsyncadd [#allocation6], 4294959104  ;;  %v102_v0 = vld [vmem:[#allocation5 + $0x178] sm:$0xff]  ;;  %v101_v2 = vld [vmem:[#allocation5 + $0x170] sm:$0xff] }
   0xe   :  { %v70_v1 = vld [vmem:[#allocation5 + $0x78] sm:$0xff]  ;;  %182 = vmatpush.msra.mxu2 %v102_v0  ;;  %v69_v4 = vld [vmem:[#allocation5 + $0x70] sm:$0xff]  ;;  %v100_v6 = vld [vmem:[#allocation5 + $0x168] sm:$0xff] }
   0xf   :  { %142 = vmatpush.msra.mxu0 %v70_v1  ;;  %v118_v3 = vld [vmem:[#allocation5 + $0x1f8] sm:$0xff]  ;;  %v117_v7 = vld [vmem:[#allocation5 + $0x1f0] sm:$0xff]  ;;  %v68_v8 = vld [vmem:[#allocation5 + $0x68] sm:$0xff] }
  0x10   :  { %v86_v5 = vld [vmem:[#allocation5 + $0xf8] sm:$0xff]  ;;  %202 = vmatpush.msra.mxu3 %v118_v3  ;;  %183 = vmatpush.msra.mxu2 %v101_v2  ;;  %v85_v9 = vld [vmem:[#allocation5 + $0xf0] sm:$0xff]  ;;  %v116_v10 = vld [vmem:[#allocation5 + $0x1e8] sm:$0xff] }
  0x11   :  { %162 = vmatpush.msra.mxu1 %v86_v5  ;;  %143 = vmatpush.msra.mxu0 %v69_v4  ;;  %v99_v11 = vld [vmem:[#allocation5 + $0x160] sm:$0xff]  ;;  %v84_v13 = vld [vmem:[#allocation5 + $0xe8] sm:$0xff]  ;;  %v98_v16 = vld [vmem:[#allocation5 + $0x158] sm:$0xff] }
  0x12   :  { %203 = vmatpush.msra.mxu3 %v117_v7  ;;  %v67_v12 = vld [vmem:[#allocation5 + $0x60] sm:$0xff]  ;;  %184 = vmatpush.msra.mxu2 %v100_v6  ;;  %v66_v17 = vld [vmem:[#allocation5 + $0x58] sm:$0xff]  ;;  %v97_v20 = vld [vmem:[#allocation5 + $0x150] sm:$0xff] }
  0x13   :  { %163 = vmatpush.msra.mxu1 %v85_v9  ;;  %144 = vmatpush.msra.mxu0 %v68_v8  ;;  %v115_v14 = vld [vmem:[#allocation5 + $0x1e0] sm:$0xff]  ;;  %v114_v18 = vld [vmem:[#allocation5 + $0x1d8] sm:$0xff]  ;;  %v65_v21 = vld [vmem:[#allocation5 + $0x50] sm:$0xff] }
  0x14   :  { %v83_v15 = vld [vmem:[#allocation5 + $0xe0] sm:$0xff]  ;;  %204 = vmatpush.msra.mxu3 %v116_v10  ;;  %185 = vmatpush.msra.mxu2 %v99_v11  ;;  %v82_v19 = vld [vmem:[#allocation5 + $0xd8] sm:$0xff]  ;;  %v113_v22 = vld [vmem:[#allocation5 + $0x1d0] sm:$0xff] }
  0x15   :  { %164 = vmatpush.msra.mxu1 %v84_v13  ;;  %145 = vmatpush.msra.mxu0 %v67_v12  ;;  %v81_v23 = vld [vmem:[#allocation5 + $0xd0] sm:$0xff]  ;;  %v96_v24 = vld [vmem:[#allocation5 + $0x148] sm:$0xff]  ;;  %v95_v28 = vld [vmem:[#allocation5 + $0x140] sm:$0xff] }
  0x16   :  { %205 = vmatpush.msra.mxu3 %v115_v14  ;;  %186 = vmatpush.msra.mxu2 %v98_v16  ;;  %v64_v25 = vld [vmem:[#allocation5 + $0x48] sm:$0xff]  ;;  %v63_v29 = vld [vmem:[#allocation5 + $0x40] sm:$0xff]  ;;  %v94_v32 = vld [vmem:[#allocation5 + $0x138] sm:$0xff] }
  0x17   :  { %165 = vmatpush.msra.mxu1 %v83_v15  ;;  %146 = vmatpush.msra.mxu0 %v66_v17  ;;  %v112_v26 = vld [vmem:[#allocation5 + $0x1c8] sm:$0xff]  ;;  %v111_v30 = vld [vmem:[#allocation5 + $0x1c0] sm:$0xff]  ;;  %v62_v33 = vld [vmem:[#allocation5 + $0x38] sm:$0xff] }
  0x18   :  { %206 = vmatpush.msra.mxu3 %v114_v18  ;;  %187 = vmatpush.msra.mxu2 %v97_v20  ;;  %v80_v27 = vld [vmem:[#allocation5 + $0xc8] sm:$0xff]  ;;  %v79_v31 = vld [vmem:[#allocation5 + $0xc0] sm:$0xff]  ;;  %v110_v34 = vld [vmem:[#allocation5 + $0x1b8] sm:$0xff] }
  0x19   :  { %166 = vmatpush.msra.mxu1 %v82_v19  ;;  %147 = vmatpush.msra.mxu0 %v65_v21  ;;  %v78_v35 = vld [vmem:[#allocation5 + $0xb8] sm:$0xff]  ;;  %v93_v36 = vld [vmem:[#allocation5 + $0x130] sm:$0xff]  ;;  %v92_v40 = vld [vmem:[#allocation5 + $0x128] sm:$0xff] }
  0x1a   :  { %207 = vmatpush.msra.mxu3 %v113_v22  ;;  %188 = vmatpush.msra.mxu2 %v96_v24  ;;  %v61_v37 = vld [vmem:[#allocation5 + $0x30] sm:$0xff]  ;;  %v60_v41 = vld [vmem:[#allocation5 + $0x28] sm:$0xff]  ;;  %v91_v42 = vld [vmem:[#allocation5 + $0x120] sm:$0xff] }
  0x1b   :  { %167 = vmatpush.msra.mxu1 %v81_v23  ;;  %148 = vmatpush.msra.mxu0 %v64_v25  ;;  %v109_v38 = vld [vmem:[#allocation5 + $0x1b0] sm:$0xff]  ;;  %v108_v43 = vld [vmem:[#allocation5 + $0x1a8] sm:$0xff]  ;;  %v59_v44 = vld [vmem:[#allocation5 + $0x20] sm:$0xff] }
  0x1c   :  { %208 = vmatpush.msra.mxu3 %v112_v26  ;;  %189 = vmatpush.msra.mxu2 %v95_v28  ;;  %v77_v39 = vld [vmem:[#allocation5 + $0xb0] sm:$0xff]  ;;  %v76_v45 = vld [vmem:[#allocation5 + $0xa8] sm:$0xff]  ;;  %v47_v46 = vld [vmem:[#allocation2] sm:$0xff] }
  0x1d   :  { %168 = vmatpush.msra.mxu1 %v80_v27  ;;  %149 = vmatpush.msra.mxu0 %v63_v29  ;;  %v48_v47 = vld [vmem:[#allocation2 + $0x8] sm:$0xff]  ;;  %v49_v48 = vld [vmem:[#allocation2 + $0x10] sm:$0xff]  ;;  %v107_v49 = vld [vmem:[#allocation5 + $0x1a0] sm:$0xff]  ;;  %v51_v52 = vmax.f32 %v47_v46, 0.0 }
  0x1e   :  { %209 = vmatpush.msra.mxu3 %v111_v30  ;;  %190 = vmatpush.msra.mxu2 %v94_v32  ;;  %v75_v50 = vld [vmem:[#allocation5 + $0xa0] sm:$0xff]  ;;  %v50_v51 = vld [vmem:[#allocation2 + $0x18] sm:$0xff]  ;;  %v52_v53 = vmax.f32 %v48_v47, 0.0  ;;  %v53_v54 = vmax.f32 %v49_v48, 0.0  ;;  %v89_v60 = vld [vmem:[#allocation5 + $0x110] sm:$0xff] }
  0x1f   :  { %169 = vmatpush.msra.mxu1 %v79_v31  ;;  %150 = vmatpush.msra.mxu0 %v62_v33  ;;  %v90_v55 = vld [vmem:[#allocation5 + $0x118] sm:$0xff]  ;;  %v54_v57 = vmax.f32 %v50_v51, 0.0  ;;  %127 = vst [vmem:[#allocation1] ss:$4 sm:$0xff] %v51_v52  ;;  %v57_v61 = vld [vmem:[#allocation5 + $0x10] sm:$0xff]  ;;  %v88_v0 = vld [vmem:[#allocation5 + $0x108] sm:$0xff] }
  0x20   :  { %210 = vmatpush.msra.mxu3 %v110_v34  ;;  %191 = vmatpush.msra.mxu2 %v93_v36  ;;  %v58_v56 = vld [vmem:[#allocation5 + $0x18] sm:$0xff]  ;;  %129 = vst [vmem:[#allocation1 + $0x1] ss:$4 sm:$0xff] %v52_v53  ;;  %v105_v62 = vld [vmem:[#allocation5 + $0x190] sm:$0xff]  ;;  %v56_v1 = vld [vmem:[#allocation5 + $0x8] sm:$0xff] }
  0x21   :  { %170 = vmatpush.msra.mxu1 %v78_v35  ;;  %151 = vmatpush.msra.mxu0 %v61_v37  ;;  %v106_v58 = vld [vmem:[#allocation5 + $0x198] sm:$0xff]  ;;  %v73_v63 = vld [vmem:[#allocation5 + $0x90] sm:$0xff]  ;;  %131 = vst [vmem:[#allocation1 + $0x2] ss:$4 sm:$0xff] %v53_v54  ;;  %v104_v2 = vld [vmem:[#allocation5 + $0x188] sm:$0xff] }
  0x22   :  { %211 = vmatpush.msra.mxu3 %v109_v38  ;;  %192 = vmatpush.msra.mxu2 %v92_v40  ;;  %v74_v59 = vld [vmem:[#allocation5 + $0x98] sm:$0xff]  ;;  %133 = vst [vmem:[#allocation1 + $0x3] ss:$4 sm:$0xff] %v54_v57  ;;  %v72_v3 = vld [vmem:[#allocation5 + $0x88] sm:$0xff]  ;;  %v87_v4 = vld [vmem:[#allocation5 + $0x100] sm:$0xff] }
  0x23   :  { %171 = vmatpush.msra.mxu1 %v77_v39  ;;  %152 = vmatpush.msra.mxu0 %v60_v41  ;;  %v55_v5 = vld [vmem:[#allocation5] sm:$0xff]  ;;  %v250_v12 = vld [vmem:[%s370_s2] ss:$0 sm:$0xff] }
  0x24   :  { %212 = vmatpush.msra.mxu3 %v108_v43  ;;  %193 = vmatpush.msra.mxu2 %v91_v42  ;;  %v103_v6 = vld [vmem:[#allocation5 + $0x180] sm:$0xff] }
  0x25   :  { %172 = vmatpush.msra.mxu1 %v76_v45  ;;  %153 = vmatpush.msra.mxu0 %v59_v44  ;;  %v71_v7 = vld [vmem:[#allocation5 + $0x80] sm:$0xff] }
  0x26   :  { %213 = vmatpush.msra.mxu3 %v107_v49  ;;  %194 = vmatpush.msra.mxu2 %v90_v55 }
  0x27   :  { %173 = vmatpush.msra.mxu1 %v75_v50  ;;  %154 = vmatpush.msra.mxu0 %v58_v56 }
  0x28   :  { %214 = vmatpush.msra.mxu3 %v106_v58  ;;  %195 = vmatpush.msra.mxu2 %v89_v60 }
  0x29   :  { %174 = vmatpush.msra.mxu1 %v74_v59  ;;  %155 = vmatpush.msra.mxu0 %v57_v61  ;;  %v136_v8 = vld.sshfl [vmem:[#allocation1 + $0x10] sm:$0xff pattern:$0x73625140]  ;;  %v134_v9 = vld.sshfl [vmem:[#allocation1] sm:$0xff pattern:$0x73625140] }
  0x2a   :  { %215 = vmatpush.msra.mxu3 %v105_v62  ;;  %196 = vmatpush.msra.mxu2 %v88_v0  ;;  %v137_v10 = vld.sshfl [vmem:[#allocation1 + $0x18] sm:$0xff pattern:$0x73625140]  ;;  %v135_v11 = vld.sshfl [vmem:[#allocation1 + $0x8] sm:$0xff pattern:$0x73625140] }
  0x2b   :  { %175 = vmatpush.msra.mxu1 %v73_v63  ;;  %156 = vmatpush.msra.mxu0 %v56_v1 }
  0x2c   :  { %216 = vmatpush.msra.mxu3 %v104_v2  ;;  %197 = vmatpush.msra.mxu2 %v87_v4 }
  0x2d   :  { %176 = vmatpush.msra.mxu1 %v72_v3  ;;  %157 = vmatpush.msra.mxu0 %v55_v5 }
  0x2e   :  { %217 = vmatpush.msra.mxu3 %v103_v6  ;;  %198 = vmatmul.f32.vlgmr.msra.gmra.mxu2 %v136_v8 }
  0x2f   :  { %177 = vmatpush.msra.mxu1 %v71_v7  ;;  %158 = vmatmul.f32.vlgmr.msra.gmra.mxu0 %v134_v9 }
  0x30   :  { %218 = vmatmul.f32.vlgmr.msra.gmra.mxu3 %v137_v10  ;;  %178 = vmatmul.f32.vlgmr.msra.gmra.mxu1 %v135_v11 }
  0xac   :  { %v159_v13 = vpop.f32.mrf.mxu0 }
  0xad   :  { %v160_v14 = vadd.f32 %v250_v12, %v159_v13  ;;  %v179_v15 = vpop.f32.mrf.mxu1 }
  0xaf   :  { %v180_v16 = vadd.f32 %v179_v15, %v160_v14 }
  0xb1   :  { %v199_v17 = vpop.f32.mrf.mxu2 }
  0xb2   :  { %v200_v18 = vadd.f32 %v199_v17, %v180_v16 }
  0xb3   :  { %v219_v19 = vpop.f32.mrf.mxu3 }
  0xb4   :  { %v220_v20 = vadd.f32 %v219_v19, %v200_v18 }
  0xb6   :  { %222 = vst [vmem:[#allocation7] sm:$0xff] %v220_v20 }
  0xb7   :  { %226 = vsyncadd [#allocation4], 96  ;;  %s229_s26 = sshll.u32 %s371_s3, 4  ;;  %s333_s27 = smov [#allocation7]   ;;  %s230_s26 = int_to_ptr.hbm [resolvable:$true] %s229_s26 }
  0xb8   :  { %s227_s28 = sshll.u32 %s333_s27, 4  ;;  %s334_s29 = smov 32   ;;  %s228_s28 = int_to_ptr.vmem [resolvable:$true] %s227_s28 }
  0xb9   :  { %s335_s2 = smov 2  }
  0xba   :  { %235 = dma.vmem_to_hbm [thread:$0]  %s228_s28, 32, %s230_s26, [#allocation4], %s334_s29, %s334_s29, %s335_s2  }
  0xbb   :  { %327 = dma.done.wait [#allocation4], 128  }
  0xbc   :  { %328 = vsyncadd [#allocation4], 4294967168 }
  0xbd   :  { %240 = vsyncpa [#allocation3], 1 }
  0xbe   :  { %241 = vsyncpa [#allocation6], 1 }
  0xbf   :  { %242 = vsyncpa [#allocation4], 1 }

// kernel: tpu_custom_call.1
= control target key start
LH: loop header
LB: loop body
LE: loop exit
PB: predicated region body
PF: predicated region fallthrough
CT: control target
= control target key end

     0   :  { %8 = vsyncpa [#allocation3], 0  ;;  %s368_s0 = inlined_call_operand.hbm [shape: f32[2,512], index: 0, kind: input, shape index: {}]   ;;  %s369_s1 = inlined_call_operand.hbm [shape: f32[512,128], index: 1, kind: input, shape index: {}]   ;;  %s370_s2 = inlined_call_operand.vmem [shape: f32[1,128], index: 2, kind: input, shape index: {}]   ;;  %s371_s3 = inlined_call_operand.hbm [shape: f32[2,128], index: 3, kind: output, shape index: {}]  }
   0x1   :  { %9 = vsyncpa [#allocation6], 0 }
   0x2   :  { %10 = vsyncpa [#allocation4], 0 }
   0x3   :  { %14 = vsyncadd [#allocation3], 384  ;;  %s15_s14 = sshll.u32 %s368_s0, 4  ;;  %s329_s15 = smov [#allocation2]   ;;  %s16_s14 = int_to_ptr.hbm [resolvable:$true] %s15_s14 }
   0x4   :  { %s17_s16 = sshll.u32 %s329_s15, 4  ;;  %s28_s19 = sshll.u32 %s369_s1, 4  ;;  %s18_s16 = int_to_ptr.vmem [resolvable:$true] %s17_s16  ;;  %s29_s19 = int_to_ptr.hbm [resolvable:$true] %s28_s19 }
   0x5   :  { %s330_s20 = smov 128   ;;  %s331_s21 = smov 8  }
   0x6   :  { %23 = dma.hbm_to_vmem [thread:$0]  %s16_s14, 128, %s18_s16, [#allocation3], %s330_s20, %s330_s20, %s331_s21  }
   0x7   :  { %s332_s22 = smov [#allocation5]  }
   0x8   :  { %s30_s23 = sshll.u32 %s332_s22, 4  ;;  %s31_s23 = int_to_ptr.vmem [resolvable:$true] %s30_s23 }
   0x9   :  { %36 = dma.hbm_to_vmem [thread:$0]  %s29_s19, 8192, %s31_s23, [#allocation6], %s330_s20, %s330_s20, %s331_s21  }
   0xa   :  { %323 = dma.done.wait [#allocation3], 512  }
   0xb   :  { %324 = vsyncadd [#allocation3], 4294966784 }
   0xc   :  { %325 = dma.done.wait [#allocation6], 8192  }
   0xd   :  { %326 = vsyncadd [#allocation6], 4294959104  ;;  %v102_v0 = vld [vmem:[#allocation5 + $0x178] sm:$0xff]  ;;  %v101_v2 = vld [vmem:[#allocation5 + $0x170] sm:$0xff] }
   0xe   :  { %v70_v1 = vld [vmem:[#allocation5 + $0x78] sm:$0xff]  ;;  %182 = vmatpush.msra.mxu2 %v102_v0  ;;  %v69_v4 = vld [vmem:[#allocation5 + $0x70] sm:$0xff]  ;;  %v100_v6 = vld [vmem:[#allocation5 + $0x168] sm:$0xff] }
   0xf   :  { %142 = vmatpush.msra.mxu0 %v70_v1  ;;  %v118_v3 = vld [vmem:[#allocation5 + $0x1f8] sm:$0xff]  ;;  %v117_v7 = vld [vmem:[#allocation5 + $0x1f0] sm:$0xff]  ;;  %v68_v8 = vld [vmem:[#allocation5 + $0x68] sm:$0xff] }
  0x10   :  { %v86_v5 = vld [vmem:[#allocation5 + $0xf8] sm:$0xff]  ;;  %202 = vmatpush.msra.mxu3 %v118_v3  ;;  %183 = vmatpush.msra.mxu2 %v101_v2  ;;  %v85_v9 = vld [vmem:[#allocation5 + $0xf0] sm:$0xff]  ;;  %v116_v10 = vld [vmem:[#allocation5 + $0x1e8] sm:$0xff] }
  0x11   :  { %162 = vmatpush.msra.mxu1 %v86_v5  ;;  %143 = vmatpush.msra.mxu0 %v69_v4  ;;  %v99_v11 = vld [vmem:[#allocation5 + $0x160] sm:$0xff]  ;;  %v84_v13 = vld [vmem:[#allocation5 + $0xe8] sm:$0xff]  ;;  %v98_v16 = vld [vmem:[#allocation5 + $0x158] sm:$0xff] }
  0x12   :  { %203 = vmatpush.msra.mxu3 %v117_v7  ;;  %v67_v12 = vld [vmem:[#allocation5 + $0x60] sm:$0xff]  ;;  %184 = vmatpush.msra.mxu2 %v100_v6  ;;  %v66_v17 = vld [vmem:[#allocation5 + $0x58] sm:$0xff]  ;;  %v97_v20 = vld [vmem:[#allocation5 + $0x150] sm:$0xff] }
  0x13   :  { %163 = vmatpush.msra.mxu1 %v85_v9  ;;  %144 = vmatpush.msra.mxu0 %v68_v8  ;;  %v115_v14 = vld [vmem:[#allocation5 + $0x1e0] sm:$0xff]  ;;  %v114_v18 = vld [vmem:[#allocation5 + $0x1d8] sm:$0xff]  ;;  %v65_v21 = vld [vmem:[#allocation5 + $0x50] sm:$0xff] }
  0x14   :  { %v83_v15 = vld [vmem:[#allocation5 + $0xe0] sm:$0xff]  ;;  %204 = vmatpush.msra.mxu3 %v116_v10  ;;  %185 = vmatpush.msra.mxu2 %v99_v11  ;;  %v82_v19 = vld [vmem:[#allocation5 + $0xd8] sm:$0xff]  ;;  %v113_v22 = vld [vmem:[#allocation5 + $0x1d0] sm:$0xff] }
  0x15   :  { %164 = vmatpush.msra.mxu1 %v84_v13  ;;  %145 = vmatpush.msra.mxu0 %v67_v12  ;;  %v81_v23 = vld [vmem:[#allocation5 + $0xd0] sm:$0xff]  ;;  %v96_v24 = vld [vmem:[#allocation5 + $0x148] sm:$0xff]  ;;  %v95_v28 = vld [vmem:[#allocation5 + $0x140] sm:$0xff] }
  0x16   :  { %205 = vmatpush.msra.mxu3 %v115_v14  ;;  %186 = vmatpush.msra.mxu2 %v98_v16  ;;  %v64_v25 = vld [vmem:[#allocation5 + $0x48] sm:$0xff]  ;;  %v63_v29 = vld [vmem:[#allocation5 + $0x40] sm:$0xff]  ;;  %v94_v32 = vld [vmem:[#allocation5 + $0x138] sm:$0xff] }
  0x17   :  { %165 = vmatpush.msra.mxu1 %v83_v15  ;;  %146 = vmatpush.msra.mxu0 %v66_v17  ;;  %v112_v26 = vld [vmem:[#allocation5 + $0x1c8] sm:$0xff]  ;;  %v111_v30 = vld [vmem:[#allocation5 + $0x1c0] sm:$0xff]  ;;  %v62_v33 = vld [vmem:[#allocation5 + $0x38] sm:$0xff] }
  0x18   :  { %206 = vmatpush.msra.mxu3 %v114_v18  ;;  %187 = vmatpush.msra.mxu2 %v97_v20  ;;  %v80_v27 = vld [vmem:[#allocation5 + $0xc8] sm:$0xff]  ;;  %v79_v31 = vld [vmem:[#allocation5 + $0xc0] sm:$0xff]  ;;  %v110_v34 = vld [vmem:[#allocation5 + $0x1b8] sm:$0xff] }
  0x19   :  { %166 = vmatpush.msra.mxu1 %v82_v19  ;;  %147 = vmatpush.msra.mxu0 %v65_v21  ;;  %v78_v35 = vld [vmem:[#allocation5 + $0xb8] sm:$0xff]  ;;  %v93_v36 = vld [vmem:[#allocation5 + $0x130] sm:$0xff]  ;;  %v92_v40 = vld [vmem:[#allocation5 + $0x128] sm:$0xff] }
  0x1a   :  { %207 = vmatpush.msra.mxu3 %v113_v22  ;;  %188 = vmatpush.msra.mxu2 %v96_v24  ;;  %v61_v37 = vld [vmem:[#allocation5 + $0x30] sm:$0xff]  ;;  %v60_v41 = vld [vmem:[#allocation5 + $0x28] sm:$0xff]  ;;  %v91_v42 = vld [vmem:[#allocation5 + $0x120] sm:$0xff] }
  0x1b   :  { %167 = vmatpush.msra.mxu1 %v81_v23  ;;  %148 = vmatpush.msra.mxu0 %v64_v25  ;;  %v109_v38 = vld [vmem:[#allocation5 + $0x1b0] sm:$0xff]  ;;  %v108_v43 = vld [vmem:[#allocation5 + $0x1a8] sm:$0xff]  ;;  %v59_v44 = vld [vmem:[#allocation5 + $0x20] sm:$0xff] }
  0x1c   :  { %208 = vmatpush.msra.mxu3 %v112_v26  ;;  %189 = vmatpush.msra.mxu2 %v95_v28  ;;  %v77_v39 = vld [vmem:[#allocation5 + $0xb0] sm:$0xff]  ;;  %v76_v45 = vld [vmem:[#allocation5 + $0xa8] sm:$0xff]  ;;  %v47_v46 = vld [vmem:[#allocation2] sm:$0xff] }
  0x1d   :  { %168 = vmatpush.msra.mxu1 %v80_v27  ;;  %149 = vmatpush.msra.mxu0 %v63_v29  ;;  %v48_v47 = vld [vmem:[#allocation2 + $0x8] sm:$0xff]  ;;  %v49_v48 = vld [vmem:[#allocation2 + $0x10] sm:$0xff]  ;;  %v107_v49 = vld [vmem:[#allocation5 + $0x1a0] sm:$0xff]  ;;  %v51_v52 = vmax.f32 %v47_v46, 0.0 }
  0x1e   :  { %209 = vmatpush.msra.mxu3 %v111_v30  ;;  %190 = vmatpush.msra.mxu2 %v94_v32  ;;  %v75_v50 = vld [vmem:[#allocation5 + $0xa0] sm:$0xff]  ;;  %v50_v51 = vld [vmem:[#allocation2 + $0x18] sm:$0xff]  ;;  %v52_v53 = vmax.f32 %v48_v47, 0.0  ;;  %v53_v54 = vmax.f32 %v49_v48, 0.0  ;;  %v89_v60 = vld [vmem:[#allocation5 + $0x110] sm:$0xff] }
  0x1f   :  { %169 = vmatpush.msra.mxu1 %v79_v31  ;;  %150 = vmatpush.msra.mxu0 %v62_v33  ;;  %v90_v55 = vld [vmem:[#allocation5 + $0x118] sm:$0xff]  ;;  %v54_v57 = vmax.f32 %v50_v51, 0.0  ;;  %127 = vst [vmem:[#allocation1] ss:$4 sm:$0xff] %v51_v52  ;;  %v57_v61 = vld [vmem:[#allocation5 + $0x10] sm:$0xff]  ;;  %v88_v0 = vld [vmem:[#allocation5 + $0x108] sm:$0xff] }
  0x20   :  { %210 = vmatpush.msra.mxu3 %v110_v34  ;;  %191 = vmatpush.msra.mxu2 %v93_v36  ;;  %v58_v56 = vld [vmem:[#allocation5 + $0x18] sm:$0xff]  ;;  %129 = vst [vmem:[#allocation1 + $0x1] ss:$4 sm:$0xff] %v52_v53  ;;  %v105_v62 = vld [vmem:[#allocation5 + $0x190] sm:$0xff]  ;;  %v56_v1 = vld [vmem:[#allocation5 + $0x8] sm:$0xff] }
  0x21   :  { %170 = vmatpush.msra.mxu1 %v78_v35  ;;  %151 = vmatpush.msra.mxu0 %v61_v37  ;;  %v106_v58 = vld [vmem:[#allocation5 + $0x198] sm:$0xff]  ;;  %v73_v63 = vld [vmem:[#allocation5 + $0x90] sm:$0xff]  ;;  %131 = vst [vmem:[#allocation1 + $0x2] ss:$4 sm:$0xff] %v53_v54  ;;  %v104_v2 = vld [vmem:[#allocation5 + $0x188] sm:$0xff] }
  0x22   :  { %211 = vmatpush.msra.mxu3 %v109_v38  ;;  %192 = vmatpush.msra.mxu2 %v92_v40  ;;  %v74_v59 = vld [vmem:[#allocation5 + $0x98] sm:$0xff]  ;;  %133 = vst [vmem:[#allocation1 + $0x3] ss:$4 sm:$0xff] %v54_v57  ;;  %v72_v3 = vld [vmem:[#allocation5 + $0x88] sm:$0xff]  ;;  %v87_v4 = vld [vmem:[#allocation5 + $0x100] sm:$0xff] }
  0x23   :  { %171 = vmatpush.msra.mxu1 %v77_v39  ;;  %152 = vmatpush.msra.mxu0 %v60_v41  ;;  %v55_v5 = vld [vmem:[#allocation5] sm:$0xff]  ;;  %v250_v12 = vld [vmem:[%s370_s2] ss:$0 sm:$0xff] }
  0x24   :  { %212 = vmatpush.msra.mxu3 %v108_v43  ;;  %193 = vmatpush.msra.mxu2 %v91_v42  ;;  %v103_v6 = vld [vmem:[#allocation5 + $0x180] sm:$0xff] }
  0x25   :  { %172 = vmatpush.msra.mxu1 %v76_v45  ;;  %153 = vmatpush.msra.mxu0 %v59_v44  ;;  %v71_v7 = vld [vmem:[#allocation5 + $0x80] sm:$0xff] }
  0x26   :  { %213 = vmatpush.msra.mxu3 %v107_v49  ;;  %194 = vmatpush.msra.mxu2 %v90_v55 }
  0x27   :  { %173 = vmatpush.msra.mxu1 %v75_v50  ;;  %154 = vmatpush.msra.mxu0 %v58_v56 }
  0x28   :  { %214 = vmatpush.msra.mxu3 %v106_v58  ;;  %195 = vmatpush.msra.mxu2 %v89_v60 }
  0x29   :  { %174 = vmatpush.msra.mxu1 %v74_v59  ;;  %155 = vmatpush.msra.mxu0 %v57_v61  ;;  %v136_v8 = vld.sshfl [vmem:[#allocation1 + $0x10] sm:$0xff pattern:$0x73625140]  ;;  %v134_v9 = vld.sshfl [vmem:[#allocation1] sm:$0xff pattern:$0x73625140] }
  0x2a   :  { %215 = vmatpush.msra.mxu3 %v105_v62  ;;  %196 = vmatpush.msra.mxu2 %v88_v0  ;;  %v137_v10 = vld.sshfl [vmem:[#allocation1 + $0x18] sm:$0xff pattern:$0x73625140]  ;;  %v135_v11 = vld.sshfl [vmem:[#allocation1 + $0x8] sm:$0xff pattern:$0x73625140] }
  0x2b   :  { %175 = vmatpush.msra.mxu1 %v73_v63  ;;  %156 = vmatpush.msra.mxu0 %v56_v1 }
  0x2c   :  { %216 = vmatpush.msra.mxu3 %v104_v2  ;;  %197 = vmatpush.msra.mxu2 %v87_v4 }
  0x2d   :  { %176 = vmatpush.msra.mxu1 %v72_v3  ;;  %157 = vmatpush.msra.mxu0 %v55_v5 }
  0x2e   :  { %217 = vmatpush.msra.mxu3 %v103_v6  ;;  %198 = vmatmul.f32.vlgmr.msra.gmra.mxu2 %v136_v8 }
  0x2f   :  { %177 = vmatpush.msra.mxu1 %v71_v7  ;;  %158 = vmatmul.f32.vlgmr.msra.gmra.mxu0 %v134_v9 }
  0x30   :  { %218 = vmatmul.f32.vlgmr.msra.gmra.mxu3 %v137_v10  ;;  %178 = vmatmul.f32.vlgmr.msra.gmra.mxu1 %v135_v11 }
  0xac   :  { %v159_v13 = vpop.f32.mrf.mxu0 }
  0xad   :  { %v160_v14 = vadd.f32 %v250_v12, %v159_v13  ;;  %v179_v15 = vpop.f32.mrf.mxu1 }
  0xaf   :  { %v180_v16 = vadd.f32 %v179_v15, %v160_v14 }
  0xb1   :  { %v199_v17 = vpop.f32.mrf.mxu2 }
  0xb2   :  { %v200_v18 = vadd.f32 %v199_v17, %v180_v16 }
  0xb3   :  { %v219_v19 = vpop.f32.mrf.mxu3 }
  0xb4   :  { %v220_v20 = vadd.f32 %v219_v19, %v200_v18 }
  0xb6   :  { %222 = vst [vmem:[#allocation7] sm:$0xff] %v220_v20 }
  0xb7   :  { %226 = vsyncadd [#allocation4], 96  ;;  %s229_s26 = sshll.u32 %s371_s3, 4  ;;  %s333_s27 = smov [#allocation7]   ;;  %s230_s26 = int_to_ptr.hbm [resolvable:$true] %s229_s26 }
  0xb8   :  { %s227_s28 = sshll.u32 %s333_s27, 4  ;;  %s334_s29 = smov 32   ;;  %s228_s28 = int_to_ptr.vmem [resolvable:$true] %s227_s28 }
  0xb9   :  { %s335_s2 = smov 2  }
  0xba   :  { %235 = dma.vmem_to_hbm [thread:$0]  %s228_s28, 32, %s230_s26, [#allocation4], %s334_s29, %s334_s29, %s335_s2  }
  0xbb   :  { %327 = dma.done.wait [#allocation4], 128  }
  0xbc   :  { %328 = vsyncadd [#allocation4], 4294967168 }
  0xbd   :  { %240 = vsyncpa [#allocation3], 1 }
  0xbe   :  { %241 = vsyncpa [#allocation6], 1 }
  0xbf   :  { %242 = vsyncpa [#allocation4], 1 }

</bundles_post_ra>
